<compile_context>
chip_gen: v6e
topology: v6e:2x2x1
jax: 0.10.0
libtpu: 0.0.40
codegen_flags: <defaults>
</compile_context>

<pallas_src>
import functools

import numpy as np
import jax
import jax.numpy as jnp
from jax.experimental import pallas as pl
from jax.experimental.pallas import tpu as pltpu


# ----------------------------------------------------------------------------
# PE buffer construction (equivalent to the torch buffer registered in __init__)
# ----------------------------------------------------------------------------
def make_positional_encoding_table(max_len: int, d_model: int,
                                   dtype=jnp.float32) -> jnp.ndarray:
    position = jnp.arange(max_len, dtype=jnp.float32)[:, None]           # [L, 1]
    div_term = jnp.exp(
        jnp.arange(0, d_model, 2, dtype=jnp.float32)
        * (-np.log(10000.0) / d_model))                                   # [D/2]
    ang = position * div_term                                             # [L, D/2]
    pe = jnp.zeros((max_len, d_model), dtype=jnp.float32)
    pe = pe.at[:, 0::2].set(jnp.sin(ang))
    pe = pe.at[:, 1::2].set(jnp.cos(ang))
    return pe.astype(dtype)                                               # [L, D]


# ----------------------------------------------------------------------------
# Pallas kernels (operate on the flattened, lane-dense (B, S*D) view)
# ----------------------------------------------------------------------------
def _pe_add_kernel(x_ref, pe_ref, o_ref):
    # x_ref: (TB, TL); pe_ref: (1, TL) broadcasts over the batch rows.
    o_ref[...] = x_ref[...] + pe_ref[...]


def _pe_add_dropout_prng_kernel(seed_ref, x_ref, pe_ref, o_ref, *,
                                threshold, scale):
    # Training-mode dropout with IN-KERNEL PRNG: keep with prob (1-p), scale
    # kept values by 1/(1-p).  The per-block seed folds in the grid step so
    # every block draws an independent mask.
    step = pl.program_id(0) * pl.num_programs(1) + pl.program_id(1)
    pltpu.prng_seed(seed_ref[0] + step)
    bits = pltpu.bitcast(pltpu.prng_random_bits(x_ref.shape), jnp.uint32)
    y = x_ref[...] + pe_ref[...]
    keep = bits >= threshold                               # uint32 VPU compare
    o_ref[...] = jnp.where(keep, y * jnp.asarray(scale, y.dtype),
                           jnp.zeros_like(y))


def _pe_add_dropout_bits_kernel(x_ref, pe_ref, bits_ref, o_ref, *,
                                threshold, scale):
    # Portable fallback: uniform uint32 bits streamed from the wrapper.
    y = x_ref[...] + pe_ref[...]
    keep = bits_ref[...] >= threshold
    o_ref[...] = jnp.where(keep, y * jnp.asarray(scale, y.dtype),
                           jnp.zeros_like(y))


# ----------------------------------------------------------------------------
# Per-generation tuning + block / grid selection
# ----------------------------------------------------------------------------
def _device_kind() -> str:
    try:
        return jax.devices()[0].device_kind.lower()
    except Exception:
        return ""


def _chip_tuning():
    """(target_block_bytes, vmem_limit_bytes) per TPU generation."""
    kind = _device_kind()
    if "v5e" in kind or "v5 lite" in kind or "v5litepod" in kind:
        return 2 << 20, 32 << 20        # ~0.8 TB/s: 2 MiB blocks already fine
    if "v6" in kind:
        return 4 << 20, 64 << 20        # 128 MiB VMEM: ample headroom
    if "v7" in kind:
        return 4 << 20, 48 << 20        # 64 MiB VMEM: stay well under
    return 2 << 20, 32 << 20            # conservative default (v4/v5p/unknown)


def _sublane_multiple(itemsize: int) -> int:
    # f32 -> 8, bf16 -> 16, int8/fp8 -> 32 (sub-32-bit packs along sublanes).
    return 8 * max(1, 4 // max(1, itemsize))


def _choose_block(B: int, SD: int, itemsize: int, target_bytes: int, sub: int):
    """Pick a lane-dense (TB, TL) block of roughly target_bytes.

    TL is a multiple of 128 or the full S*D extent; TB is a multiple of the
    dtype-aware sublane tile or the full batch extent.
    """
    if SD * itemsize * min(B, sub) <= target_bytes or SD % 128 != 0:
        TL = SD                                            # full extent
    else:
        # Aim for ~`sub` sublane rows per block at ~target_bytes.
        TL = (max(128, target_bytes // (sub * itemsize)) // 128) * 128
        TL = min(TL, SD)
    rows = max(1, target_bytes // max(1, TL * itemsize))
    if rows >= B:
        TB = B                                             # full extent
    elif rows >= sub:
        TB = (rows // sub) * sub
    else:
        TB = min(sub, B)
    return TB, TL


def _maybe_split_for_two_cores(TB, TL, B, SD, sub):
    """On v7x, avoid a (1,1) grid so work can be sharded across both TCs."""
    if "v7" not in _device_kind():
        return TB, TL
    if TB != B or TL != SD:
        return TB, TL                                      # already >1 step
    if B >= 2 * sub:
        half = -(-B // 2)
        TB = min(B, -(-half // sub) * sub)                 # round up to sublane
    elif SD % 256 == 0:
        TL = SD // 2
    return TB, TL


# ----------------------------------------------------------------------------
# Wrapper (the nn.Module forward)
# ----------------------------------------------------------------------------
def positional_encoding_forward(x: jnp.ndarray,
                                pe_table: jnp.ndarray,
                                *,
                                dropout_p: float = 0.1,
                                training: bool = False,
                                rng_key=None,
                                use_in_kernel_prng=None,
                                min_pallas_bytes: int = 1 << 20) -> jnp.ndarray:
    B, S, D = x.shape
    SD = S * D
    itemsize = x.dtype.itemsize

    # Glue: slice pe[:, :S, :], flatten, pre-cast to x.dtype once.
    pe_flat = pe_table[:S, :].reshape(1, SD).astype(x.dtype)
    x2 = x.reshape(B, SD)                                  # free (row-major)

    apply_dropout = training and dropout_p > 0.0
    if apply_dropout and dropout_p >= 1.0:                 # p == 1 drops all
        return jnp.zeros_like(x)

    # Tiny eval inputs: custom-call launch + DMA setup costs more than the add;
    # let XLA fuse the broadcast add.
    if not apply_dropout and B * SD * itemsize < min_pallas_bytes:
        return (x2 + pe_flat).reshape(B, S, D)

    target_bytes, vmem_limit = _chip_tuning()
    sub = _sublane_multiple(itemsize)
    TB, TL = _choose_block(B, SD, itemsize, target_bytes, sub)
    TB, TL = _maybe_split_for_two_cores(TB, TL, B, SD, sub)

    # SD axis outer, batch inner: the (0, l) pe block index is constant across
    # consecutive (inner) steps, so its re-DMA is elided by the pipeline.
    grid = (pl.cdiv(SD, TL), pl.cdiv(B, TB))

    # Both grid axes are data-parallel (no reduction): v7x can split them
    # across its 2 TensorCores.  Compiler params only meaningful on TPU.
    cparams = None
    if jax.default_backend() == "tpu":
        cparams = pltpu.CompilerParams(
            dimension_semantics=("parallel", "parallel"),
            vmem_limit_bytes=vmem_limit)

    out_shape = jax.ShapeDtypeStruct((B, SD), x.dtype)

    if not apply_dropout:
        x_spec = pl.BlockSpec((TB, TL), lambda l, b: (b, l))
        pe_spec = pl.BlockSpec((1, TL), lambda l, b: (0, l))
        ce = pl.CostEstimate(flops=B * SD, transcendentals=0,
                             bytes_accessed=(2 * B * SD + SD) * itemsize)
        out2 = pl.pallas_call(
            _pe_add_kernel,
            out_shape=out_shape,
            grid=grid,
            in_specs=[x_spec, pe_spec],
            out_specs=x_spec,
            compiler_params=cparams,
            cost_estimate=ce,
        )(x2, pe_flat)
        return out2.reshape(B, S, D)

    if rng_key is None:
        rng_key = jax.random.PRNGKey(0)
    # TODO(synk): bit-exact reproduction of torch's dropout RNG stream is not
    # possible; the keep/scale semantics match nn.Dropout exactly.
    threshold = np.uint32(min(int(round(dropout_p * 2.0 ** 32)), 2 ** 32 - 1))
    scale = 1.0 / (1.0 - dropout_p)

    if use_in_kernel_prng is None:
        use_in_kernel_prng = jax.default_backend() == "tpu"

    if use_in_kernel_prng:
        # In-kernel PRNG: only the base seed crosses the HBM boundary.
        seed = jax.random.randint(rng_key, (1,), 0,
                                  jnp.iinfo(jnp.int32).max, dtype=jnp.int32)
        kernel = functools.partial(_pe_add_dropout_prng_kernel,
                                   threshold=threshold, scale=scale)
        x_spec = pl.BlockSpec((TB, TL), lambda l, b, seed_ref: (b, l))
        pe_spec = pl.BlockSpec((1, TL), lambda l, b, seed_ref: (0, l))
        ce = pl.CostEstimate(flops=3 * B * SD, transcendentals=0,
                             bytes_accessed=(2 * B * SD + SD) * itemsize)
        out2 = pl.pallas_call(
            kernel,
            out_shape=out_shape,
            grid_spec=pltpu.PrefetchScalarGridSpec(
                num_scalar_prefetch=1,
                grid=grid,
                in_specs=[x_spec, pe_spec],
                out_specs=x_spec),
            compiler_params=cparams,
            cost_estimate=ce,
        )(seed, x2, pe_flat)
        return out2.reshape(B, S, D)

    # Portable fallback (interpret / non-TPU): stream uint32 bits from HBM.
    bits = jax.random.bits(rng_key, (B, SD), dtype=jnp.uint32)
    kernel = functools.partial(_pe_add_dropout_bits_kernel,
                               threshold=threshold, scale=scale)
    x_spec = pl.BlockSpec((TB, TL), lambda l, b: (b, l))
    pe_spec = pl.BlockSpec((1, TL), lambda l, b: (0, l))
    ce = pl.CostEstimate(flops=3 * B * SD, transcendentals=0,
                         bytes_accessed=(2 * B * SD + SD) * itemsize
                                        + B * SD * 4)
    out2 = pl.pallas_call(
        kernel,
        out_shape=out_shape,
        grid=grid,
        in_specs=[x_spec, pe_spec, x_spec],                # bits tiled like x
        out_specs=x_spec,
        compiler_params=cparams,
        cost_estimate=ce,
    )(x2, pe_flat, bits)
    return out2.reshape(B, S, D)


# ----------------------------------------------------------------------------
if __name__ == "__main__":
    # Module hyper-params (deterministic, in-script)
    d_model = 32
    max_len = 1000
    dropout_p = 0.1

    key = jax.random.PRNGKey(0)
    k_x, k_x2, k_drop = jax.random.split(key, 3)

    pe_table = make_positional_encoding_table(max_len, d_model)

    # --- Eval-mode forward on the module-like small shape [2, 8, 32].
    #     min_pallas_bytes=0 forces the Pallas path so the kernel is exercised.
    x = jax.random.normal(k_x, (2, 8, d_model), dtype=jnp.float32)
    out = positional_encoding_forward(x, pe_table, dropout_p=dropout_p,
                                      training=False, min_pallas_bytes=0)
    out = jax.block_until_ready(out)
    ref = x + pe_table[None, : x.shape[1], :]
    assert out.shape == x.shape and out.dtype == x.dtype
    np.testing.assert_allclose(np.asarray(out), np.asarray(ref),
                               rtol=1e-6, atol=1e-6)

    # --- Same shape through the tiny-input fast path (XLA fused add).
    out_fast = jax.block_until_ready(
        positional_encoding_forward(x, pe_table, dropout_p=dropout_p,
                                    training=False))
    np.testing.assert_allclose(np.asarray(out_fast), np.asarray(ref),
                               rtol=1e-6, atol=1e-6)

    # --- Training path: in-kernel PRNG dropout.  Every output element must be
    #     either 0 (dropped) or (x+pe)/(1-p) (kept), with ~p dropped overall.
    x_tr = jax.random.normal(k_x2, (4, 64, d_model), dtype=jnp.float32)
    ref_tr = np.asarray(x_tr + pe_table[None, : x_tr.shape[1], :])
    out_tr = positional_encoding_forward(x_tr, pe_table, dropout_p=dropout_p,
                                         training=True, rng_key=k_drop)
    out_tr = np.asarray(jax.block_until_ready(out_tr))
    assert out_tr.shape == x_tr.shape and out_tr.dtype == x_tr.dtype

    scaled = ref_tr / (1.0 - dropout_p)
    is_zero = np.abs(out_tr) <= 1e-6
    is_kept = np.abs(out_tr - scaled) <= 1e-4 * (1.0 + np.abs(scaled))
    assert np.all(is_zero | is_kept), \
        "dropout output must be 0 or scaled (x + pe)"
    drop_frac = float(np.mean(~is_kept))
    assert 0.02 <= drop_frac <= 0.25, f"unexpected dropout fraction {drop_frac}"

    print("KERNEL_OK")
</pallas_src>

<mosaic_0001>
module attributes {stable_mosaic.version = 11 : i64} {
  func.func @_pe_add_kernel(%arg0: i32, %arg1: i32, %arg2: memref<2x256xf32, #tpu.memory_space<vmem>>, %arg3: memref<1x256xf32, #tpu.memory_space<vmem>>, %arg4: memref<2x256xf32, #tpu.memory_space<vmem>>) attributes {dimension_semantics = [#tpu.dimension_semantics<arbitrary>, #tpu.dimension_semantics<arbitrary>], iteration_bounds = array<i64: 1, 1>, scalar_prefetch = 0 : i64, scratch_operands = 0 : i64, tpu.core_type = #tpu.core_type<tc>, window_params = [{transform_indices = @transform_0, window_bounds = array<i64: 2, 256>}, {transform_indices = @transform_1, window_bounds = array<i64: 1, 256>}, {transform_indices = @transform_2, window_bounds = array<i64: 2, 256>}]} {
    %c0 = arith.constant 0 : index
    %c0_0 = arith.constant 0 : index
    %0 = vector.load %arg2[%c0, %c0_0] : memref<2x256xf32, #tpu.memory_space<vmem>>, vector<2x256xf32>
    %c0_1 = arith.constant 0 : index
    %c0_2 = arith.constant 0 : index
    %1 = vector.load %arg3[%c0_1, %c0_2] : memref<1x256xf32, #tpu.memory_space<vmem>>, vector<1x256xf32>
    %2 = vector.broadcast %1 : vector<1x256xf32> to vector<2x256xf32>
    %3 = arith.addf %0, %2 : vector<2x256xf32>
    %c0_3 = arith.constant 0 : index
    %c0_4 = arith.constant 0 : index
    %4 = vector.load %arg4[%c0_3, %c0_4] : memref<2x256xf32, #tpu.memory_space<vmem>>, vector<2x256xf32>
    tpu.vector_store %arg4[%c0_3, %c0_4], %3 {strides = array<i32>} : memref<2x256xf32, #tpu.memory_space<vmem>>, vector<2x256xf32>,
    return
  }
  func.func @transform_0(%arg0: i32, %arg1: i32) -> (i32, i32) {
    %c0_i32 = arith.constant 0 : i32
    return %arg1, %arg0 : i32, i32
  }
  func.func @transform_1(%arg0: i32, %arg1: i32) -> (i32, i32) {
    %c0_i32 = arith.constant 0 : i32
    %c0_i32_0 = arith.constant 0 : i32
    return %c0_i32, %arg0 : i32, i32
  }
  func.func @transform_2(%arg0: i32, %arg1: i32) -> (i32, i32) {
    %c0_i32 = arith.constant 0 : i32
    return %arg1, %arg0 : i32, i32
  }
}

</mosaic_0001>

<bundles_post_ra>
// kernel: tpu_custom_call.1
= control target key start
LH: loop header
LB: loop body
LE: loop exit
PB: predicated region body
PF: predicated region fallthrough
CT: control target
= control target key end

     0   :  { %7 = vsyncpa [#allocation3], 0  ;;  %s172_s0 = inlined_call_operand.hbm [shape: f32[2,256], index: 0, kind: input, shape index: {}]   ;;  %s173_s1 = inlined_call_operand.hbm [shape: f32[1,256], index: 1, kind: input, shape index: {}]   ;;  %s174_s2 = inlined_call_operand.hbm [shape: f32[2,256], index: 2, kind: output, shape index: {}]  }
   0x1   :  { %8 = vsyncpa [#allocation6], 0 }
   0x2   :  { %9 = vsyncpa [#allocation4], 0  ;;  %s144_s9 = smov [#allocation2]   ;;  %s145_s11 = smov [#allocation5]  }
   0x3   :  { %s16_s10 = sshll.u32 %s144_s9, 4  ;;  %s26_s12 = sshll.u32 %s145_s11, 4  ;;  %s17_s10 = int_to_ptr.vmem [resolvable:$true] %s16_s10  ;;  %s27_s12 = int_to_ptr.vmem [resolvable:$true] %s26_s12 }
   0x4   :  { %s86_s13 = scalar_lea.vmem %s17_s10, 64  ;;  %p91_p1 = scmp.lt.s32.totalorder %s17_s10, %s17_s10 }
   0x5   :  { %p87_p0 = scmp.ne.s32.totalorder %s17_s10, %s86_s13  ;;  %p92_p2 = scmp.lt.s32.totalorder %s86_s13, %s86_s13 }
   0x7   :  { %p93_p3 = por %p92_p2, %p91_p1 }
   0x9   :  { %p94_p4 = pnand %p93_p3, %p87_p0 }
   0xb   :  { %97 = shalt.err (!%p94_p4)
}
   0xc   :  { %19 = dma.hbm_to_vmem [thread:$0]  %s172_s0, 64, %s17_s10, [#allocation3]  }
   0xd   :  { %s106_s16 = scalar_lea.vmem %s27_s12, 32  ;;  %p111_p6 = scmp.lt.s32.totalorder %s27_s12, %s27_s12 }
   0xe   :  { %p107_p5 = scmp.ne.s32.totalorder %s27_s12, %s106_s16  ;;  %p112_p7 = scmp.lt.s32.totalorder %s106_s16, %s106_s16 }
  0x10   :  { %p113_p8 = por %p112_p7, %p111_p6 }
  0x12   :  { %p114_p9 = pnand %p113_p8, %p107_p5 }
  0x14   :  { %117 = shalt.err (!%p114_p9)
}
  0x15   :  { %29 = dma.hbm_to_vmem [thread:$0]  %s173_s1, 32, %s27_s12, [#allocation6]  }
  0x16   :  { %138 = dma.done.wait [#allocation3], 64  }
  0x17   :  { %139 = vsyncadd [#allocation3], 4294967232 }
  0x18   :  { %140 = dma.done.wait [#allocation6], 32  }
  0x19   :  { %141 = vsyncadd [#allocation6], 4294967264  ;;  %v39_v0 = vlaneseq  ;;  %v146_v1 = vmov 1983009808   ;;  %v37_v7 = vld [vmem:[#allocation5] sm:$0x3] }
  0x1a   :  { %v49_v2 = vunpack.c.l.s4 %v146_v1  ;;  %v36_v12 = vld [vmem:[#allocation2] sm:$0xf]  ;;  %s147_s0 = smov [#allocation7]  }
  0x1b   :  { %v40_v3 = vshrl.u32 %v39_v0, 7  ;;  %s64_s19 = sshll.u32 %s147_s0, 4  ;;  %s65_s19 = int_to_ptr.vmem [resolvable:$true] %s64_s19 }
  0x1c   :  { %v50_v6 = vunpack.c.0.s8 %v49_v2  ;;  %s118_s1 = scalar_lea.vmem %s65_s19, 64  ;;  %p123_p11 = scmp.lt.s32.totalorder %s65_s19, %s65_s19 }
  0x1d   :  { %v41_v4 = vsub.s32 0, %v40_v3  ;;  %v45_v5 = vsub.s32 1, %v40_v3  ;;  %p119_p10 = scmp.ne.s32.totalorder %s65_s19, %s118_s1  ;;  %p124_p12 = scmp.lt.s32.totalorder %s118_s1, %s118_s1 }
  0x1e   :  { %v53_v10 = vsub.s32 %v50_v6, %v40_v3 }
  0x1f   :  { %v42_v8 = vrot.slane %v37_v7, %v41_v4  ;;  %v46_v9 = vrot.slane %v37_v7, %v45_v5  ;;  %p125_p13 = por %p124_p12, %p123_p11 }
  0x21   :  { %v47_v11 = vcombine.low %v42_v8, %v46_v9  ;;  %p126_p0 = pnand %p125_p13, %p119_p10 }
  0x23   :  { %v54_v13 = vrot.slane %v47_v11, %v53_v10 }
  0x25   :  { %v56_v14 = vadd.f32 %v54_v13, %v36_v12 }
  0x27   :  { %57 = vst [vmem:[#allocation7] sm:$0xf] %v56_v14 }
  0x28   :  { %129 = shalt.err (!%p126_p0)
}
  0x29   :  { %67 = dma.vmem_to_hbm [thread:$0]  %s65_s19, 64, %s174_s2, [#allocation4]  }
  0x2a   :  { %142 = dma.done.wait [#allocation4], 64  }
  0x2b   :  { %143 = vsyncadd [#allocation4], 4294967232 }
  0x2c   :  { %71 = vsyncpa [#allocation3], 1 }
  0x2d   :  { %72 = vsyncpa [#allocation6], 1 }
  0x2e   :  { %73 = vsyncpa [#allocation4], 1 }

</bundles_post_ra>
